<compile_context>
chip_gen: v5e
topology: v5e:2x2
jax: 0.10.0
libtpu: 0.0.40
codegen_flags: <defaults>
</compile_context>

<pallas_src>
import jax
import jax.numpy as jnp
from jax.experimental import pallas as pl
from jax.experimental.pallas import tpu as pltpu

NEG_SLOPE = 0.1015625   # DPU-compatible LeakyReLU slope
BN_EPS = 1e-5
_LANE_MULT = 256        # MXU-friendly lane granularity (256-wide MXU on v6e/v7x)
_LANE_CAP = 4096        # keeps double-buffered blocks well under v7x scoped VMEM


def _scale_pred_kernel(p_ref, w3_ref, shift_ref, wh_ref, bh_ref, out_ref):
    """One lane-chunk of the fused forward pass (channel-major layout).

    p_ref    : (9*Cin, L)    bf16 im2col patch columns (batch*spatial on lanes)
    w3_ref   : (C2, 9*Cin)   bf16 3x3 conv weights with BN scale folded in
    shift_ref: (C2, 1)       f32 folded BatchNorm shift
    wh_ref   : (3*Cout, C2)  bf16 concatenated 1x1 head weights
    bh_ref   : (3*Cout, 1)   f32 concatenated 1x1 head biases
    out_ref  : (3*Cout, L)   f32 fused output (heads stacked along sublanes)
    """
    # 3x3 conv + folded BN: one MXU matmul (bf16 operands, f32 accumulation).
    feat = jnp.dot(w3_ref[...], p_ref[...],
                   preferred_element_type=jnp.float32)       # (C2, L)
    feat = feat + shift_ref[...]
    # LeakyReLU: max(x, slope*x) is exact for 0 < slope < 1.
    feat = jnp.maximum(feat, NEG_SLOPE * feat)

    # All three 1x1 heads in a single matmul; bias add in f32.
    out = jnp.dot(wh_ref[...], feat.astype(wh_ref.dtype),
                  preferred_element_type=jnp.float32)         # (3*Cout, L)
    out_ref[...] = out + bh_ref[...]


def prepare_scale_prediction(params):
    """One-time weight preprocessing, hoisted out of the per-call hot path."""
    C2, Cin = params["w3"].shape[:2]
    K = 9 * Cin
    bn_scale = params["bn_gamma"] / jnp.sqrt(params["bn_var"] + BN_EPS)
    bn_shift = params["bn_beta"] - params["bn_mean"] * bn_scale
    # OIHW -> (O, KH, KW, I) -> (C2, 9*Cin); fold the BN scale into the weight.
    w3 = jnp.transpose(params["w3"], (0, 2, 3, 1)).reshape(C2, K)
    w3 = w3 * bn_scale[:, None]
    # Fuse the three 1x1 heads into one weight / bias.
    wh = jnp.concatenate([params["wa"][:, :, 0, 0],
                          params["wb"][:, :, 0, 0],
                          params["wc"][:, :, 0, 0]], axis=0)   # (3*Cout, C2)
    bh = jnp.concatenate([params["ba"], params["bb"], params["bc"]])
    return {
        "w3": w3.astype(jnp.bfloat16),
        "shift": bn_shift.reshape(C2, 1).astype(jnp.float32),
        "wh": wh.astype(jnp.bfloat16),
        "bh": bh.reshape(-1, 1).astype(jnp.float32),
    }


@jax.jit
def dpu_scale_prediction(x_nchw, prep):
    """Hot path. x_nchw: (N, Cin, H, W) float32. Returns 3 NCHW predictions."""
    N, Cin, H, W = x_nchw.shape
    C2, K = prep["w3"].shape
    Cout3 = prep["wh"].shape[0]
    Cout = Cout3 // 3
    HW = H * W
    total = N * HW

    # ---- im2col, channel-major: rows = (tap, cin), cols = (n, h, w) ----
    # TODO(synk): for large H*W, build the 9 taps in-kernel from a padded
    # (Cin, H+2, W+2) VMEM tile to avoid the 9x patch-matrix HBM round-trip
    # (matters most on v5e's ~820 GB/s HBM); negligible at 16x16 (~73 KB).
    x_pad = jnp.pad(x_nchw, ((0, 0), (0, 0), (1, 1), (1, 1)))
    taps = [x_pad[:, :, dy:dy + H, dx:dx + W]
            for dy in range(3) for dx in range(3)]
    patches = jnp.stack(taps, axis=0)                          # (9, N, Cin, H, W)
    patches = jnp.transpose(patches, (0, 2, 1, 3, 4)).reshape(K, total)

    # ---- lane-axis chunking over the flattened batch*spatial axis ----
    units = -(-total // _LANE_MULT)                            # ceil in 256s
    # Prefer >= 2 grid steps so v7x's second TensorCore gets work; cap the
    # block so double-buffered tiles stay far under v7x's scoped VMEM limit.
    units_per_chunk = max(1, min(_LANE_CAP // _LANE_MULT,
                                 units // 2 if units >= 2 else 1))
    lane_block = units_per_chunk * _LANE_MULT
    num_chunks = -(-units // units_per_chunk)
    l_pad = num_chunks * lane_block
    if l_pad != total:
        patches = jnp.pad(patches, ((0, 0), (0, l_pad - total)))
    patches = patches.astype(jnp.bfloat16)

    full = lambda shape: pl.BlockSpec(shape, lambda i: (0,) * len(shape))

    out = pl.pallas_call(
        _scale_pred_kernel,
        out_shape=jax.ShapeDtypeStruct((Cout3, l_pad), jnp.float32),
        grid_spec=pltpu.PrefetchScalarGridSpec(
            num_scalar_prefetch=0,
            grid=(num_chunks,),
            in_specs=[
                pl.BlockSpec((K, lane_block), lambda i: (0, i)),
                full((C2, K)),
                full((C2, 1)),
                full((Cout3, C2)),
                full((Cout3, 1)),
            ],
            out_specs=pl.BlockSpec((Cout3, lane_block), lambda i: (0, i)),
        ),
        compiler_params=pltpu.CompilerParams(
            dimension_semantics=("parallel",)),
    )(patches, prep["w3"], prep["shift"], prep["wh"], prep["bh"])

    # Drop lane padding, split heads, and restore NCHW.
    out = out[:, :total].reshape(3, Cout, N, H, W)
    out = jnp.moveaxis(out, 2, 1)                              # (3, N, Cout, H, W)
    return out[0], out[1], out[2]


# ---------------------------- reference (pure JAX) ----------------------------
def _reference(x_nchw, params):
    dn = ("NCHW", "OIHW", "NCHW")
    y = jax.lax.conv_general_dilated(
        x_nchw, params["w3"], window_strides=(1, 1), padding=((1, 1), (1, 1)),
        dimension_numbers=dn)
    scale = params["bn_gamma"] / jnp.sqrt(params["bn_var"] + BN_EPS)
    shift = params["bn_beta"] - params["bn_mean"] * scale
    y = y * scale[None, :, None, None] + shift[None, :, None, None]
    y = jnp.where(y >= 0, y, NEG_SLOPE * y)

    def head(w, b):
        o = jax.lax.conv_general_dilated(
            y, w, window_strides=(1, 1), padding="VALID", dimension_numbers=dn)
        return o + b[None, :, None, None]

    return (head(params["wa"], params["ba"]),
            head(params["wb"], params["bb"]),
            head(params["wc"], params["bc"]))


# ------------------------------------ main ------------------------------------
if __name__ == "__main__":
    N, Cin, H, W = 2, 4, 16, 16
    num_classes = 3
    C2 = 2 * Cin
    Cout = num_classes + 5

    key = jax.random.PRNGKey(0)
    ks = jax.random.split(key, 12)

    params = {
        # common 3x3 conv, no bias (bn_act=True)
        "w3": 0.1 * jax.random.normal(ks[0], (C2, Cin, 3, 3), jnp.float32),
        # BatchNorm params (eval-mode running stats)
        "bn_gamma": 1.0 + 0.1 * jax.random.normal(ks[1], (C2,), jnp.float32),
        "bn_beta": 0.1 * jax.random.normal(ks[2], (C2,), jnp.float32),
        "bn_mean": 0.1 * jax.random.normal(ks[3], (C2,), jnp.float32),
        "bn_var": jnp.abs(1.0 + 0.1 * jax.random.normal(ks[4], (C2,), jnp.float32)),
        # three 1x1 anchor heads with bias (bn_act=False)
        "wa": 0.1 * jax.random.normal(ks[5], (Cout, C2, 1, 1), jnp.float32),
        "ba": 0.1 * jax.random.normal(ks[6], (Cout,), jnp.float32),
        "wb": 0.1 * jax.random.normal(ks[7], (Cout, C2, 1, 1), jnp.float32),
        "bb": 0.1 * jax.random.normal(ks[8], (Cout,), jnp.float32),
        "wc": 0.1 * jax.random.normal(ks[9], (Cout, C2, 1, 1), jnp.float32),
        "bc": 0.1 * jax.random.normal(ks[10], (Cout,), jnp.float32),
    }

    x = jax.random.normal(ks[11], (N, Cin, H, W), jnp.float32)

    prep = prepare_scale_prediction(params)     # one-time weight preprocessing
    preds = dpu_scale_prediction(x, prep)
    preds = jax.block_until_ready(preds)

    refs = _reference(x, params)
    for p, r in zip(preds, refs):
        assert p.shape == (N, Cout, H, W), p.shape
        # bf16 MXU operands (f32 accumulation) => relaxed tolerance.
        assert jnp.allclose(p, r, atol=2e-2, rtol=2e-2), float(jnp.abs(p - r).max())

    print("KERNEL_OK")
</pallas_src>

<mosaic_0001>
module attributes {stable_mosaic.version = 11 : i64} {
  func.func @_scale_pred_kernel(%arg0: i32, %arg1: memref<36x256xbf16, #tpu.memory_space<vmem>>, %arg2: memref<8x36xbf16, #tpu.memory_space<vmem>>, %arg3: memref<8x1xf32, #tpu.memory_space<vmem>>, %arg4: memref<24x8xbf16, #tpu.memory_space<vmem>>, %arg5: memref<24x1xf32, #tpu.memory_space<vmem>>, %arg6: memref<24x256xf32, #tpu.memory_space<vmem>>) attributes {dimension_semantics = [#tpu.dimension_semantics<parallel>], iteration_bounds = array<i64: 2>, scalar_prefetch = 0 : i64, scratch_operands = 0 : i64, tpu.core_type = #tpu.core_type<tc>, window_params = [{transform_indices = @transform_0, window_bounds = array<i64: 36, 256>}, {pipeline_mode = #tpu.pipeline_mode<synchronous>, transform_indices = @transform_1, window_bounds = array<i64: 8, 36>}, {pipeline_mode = #tpu.pipeline_mode<synchronous>, transform_indices = @transform_2, window_bounds = array<i64: 8, 1>}, {pipeline_mode = #tpu.pipeline_mode<synchronous>, transform_indices = @transform_3, window_bounds = array<i64: 24, 8>}, {pipeline_mode = #tpu.pipeline_mode<synchronous>, transform_indices = @transform_4, window_bounds = array<i64: 24, 1>}, {transform_indices = @transform_5, window_bounds = array<i64: 24, 256>}]} {
    %c0 = arith.constant 0 : index
    %c0_0 = arith.constant 0 : index
    %0 = vector.load %arg2[%c0, %c0_0] : memref<8x36xbf16, #tpu.memory_space<vmem>>, vector<8x36xbf16>
    %c0_1 = arith.constant 0 : index
    %c0_2 = arith.constant 0 : index
    %1 = vector.load %arg1[%c0_1, %c0_2] : memref<36x256xbf16, #tpu.memory_space<vmem>>, vector<36x256xbf16>
    %cst = arith.constant dense<0.000000e+00> : vector<8x256xf32>
    %2 = tpu.matmul %0, %1, %cst {dimension_numbers = #tpu.dot_dimension_numbers<[1], [0], [0], [1], [0, 0, 1, 1], [], []>} : vector<8x36xbf16>, vector<36x256xbf16>, vector<8x256xf32> -> vector<8x256xf32>
    %c0_3 = arith.constant 0 : index
    %c0_4 = arith.constant 0 : index
    %3 = vector.load %arg3[%c0_3, %c0_4] : memref<8x1xf32, #tpu.memory_space<vmem>>, vector<8x1xf32>
    %4 = vector.broadcast %3 : vector<8x1xf32> to vector<8x256xf32>
    %5 = arith.addf %2, %4 : vector<8x256xf32>
    %cst_5 = arith.constant 0.1015625 : f32
    %6 = vector.broadcast %cst_5 : f32 to vector<8x256xf32>
    %7 = arith.mulf %6, %5 : vector<8x256xf32>
    %8 = arith.maximumf %5, %7 : vector<8x256xf32>
    %c0_6 = arith.constant 0 : index
    %c0_7 = arith.constant 0 : index
    %9 = vector.load %arg4[%c0_6, %c0_7] : memref<24x8xbf16, #tpu.memory_space<vmem>>, vector<24x8xbf16>
    %10 = arith.truncf %8 : vector<8x256xf32> to vector<8x256xbf16>
    %cst_8 = arith.constant dense<0.000000e+00> : vector<24x256xf32>
    %11 = tpu.matmul %9, %10, %cst_8 {dimension_numbers = #tpu.dot_dimension_numbers<[1], [0], [0], [1], [0, 0, 1, 1], [], []>} : vector<24x8xbf16>, vector<8x256xbf16>, vector<24x256xf32> -> vector<24x256xf32>
    %c0_9 = arith.constant 0 : index
    %c0_10 = arith.constant 0 : index
    %12 = vector.load %arg5[%c0_9, %c0_10] : memref<24x1xf32, #tpu.memory_space<vmem>>, vector<24x1xf32>
    %13 = vector.broadcast %12 : vector<24x1xf32> to vector<24x256xf32>
    %14 = arith.addf %11, %13 : vector<24x256xf32>
    %c0_11 = arith.constant 0 : index
    %c0_12 = arith.constant 0 : index
    %15 = vector.load %arg6[%c0_11, %c0_12] : memref<24x256xf32, #tpu.memory_space<vmem>>, vector<24x256xf32>
    tpu.vector_store %arg6[%c0_11, %c0_12], %14 {strides = array<i32>} : memref<24x256xf32, #tpu.memory_space<vmem>>, vector<24x256xf32>,
    return
  }
  func.func @transform_0(%arg0: i32) -> (i32, i32) {
    %c0_i32 = arith.constant 0 : i32
    %c0_i32_0 = arith.constant 0 : i32
    return %c0_i32, %arg0 : i32, i32
  }
  func.func @transform_1(%arg0: i32) -> (i32, i32) {
    %c0_i32 = arith.constant 0 : i32
    %c0_i32_0 = arith.constant 0 : i32
    %c0_i32_1 = arith.constant 0 : i32
    return %c0_i32, %c0_i32_0 : i32, i32
  }
  func.func @transform_2(%arg0: i32) -> (i32, i32) {
    %c0_i32 = arith.constant 0 : i32
    %c0_i32_0 = arith.constant 0 : i32
    %c0_i32_1 = arith.constant 0 : i32
    return %c0_i32, %c0_i32_0 : i32, i32
  }
  func.func @transform_3(%arg0: i32) -> (i32, i32) {
    %c0_i32 = arith.constant 0 : i32
    %c0_i32_0 = arith.constant 0 : i32
    %c0_i32_1 = arith.constant 0 : i32
    return %c0_i32, %c0_i32_0 : i32, i32
  }
  func.func @transform_4(%arg0: i32) -> (i32, i32) {
    %c0_i32 = arith.constant 0 : i32
    %c0_i32_0 = arith.constant 0 : i32
    %c0_i32_1 = arith.constant 0 : i32
    return %c0_i32, %c0_i32_0 : i32, i32
  }
  func.func @transform_5(%arg0: i32) -> (i32, i32) {
    %c0_i32 = arith.constant 0 : i32
    %c0_i32_0 = arith.constant 0 : i32
    return %c0_i32, %arg0 : i32, i32
  }
}

</mosaic_0001>

<bundles_post_ra>
// kernel: dpu_scale_prediction.1
= control target key start
LH: loop header
LB: loop body
LE: loop exit
PB: predicated region body
PF: predicated region fallthrough
CT: control target
= control target key end

     0   :  { %s661_s18 = smov 0   ;;  %s663_s19 = smov 0   ;;  %s760_s0 = inlined_call_operand.vmem [shape: bf16[36,512], index: 0, kind: input, shape index: {}]   ;;  %s761_s1 = inlined_call_operand.vmem [shape: bf16[8,36], index: 1, kind: input, shape index: {}]   ;;  %s762_s2 = inlined_call_operand.vmem [shape: f32[8,1], index: 2, kind: input, shape index: {}]   ;;  %s763_s3 = inlined_call_operand.vmem [shape: bf16[24,8], index: 3, kind: input, shape index: {}]   ;;  %s764_s4 = inlined_call_operand.vmem [shape: f32[24,1], index: 4, kind: input, shape index: {}]   ;;  %s765_s5 = inlined_call_operand.vmem [shape: f32[24,512], index: 5, kind: output, shape index: {}]  }
   0x1   :  { %s665_s20 = smov 0  }
   0x2 LB: > { %s532_s21 = sadd.s32 4294967295, %s628_s20   ;;  %s678_s22 = sadd.s32 1, %s628_s20   ;;  %s628_s20 = sphi %s665_s20, %s769_s20   ;;  %s624_s19 = sphi %s663_s19, %s768_s19   ;;  %s620_s18 = sphi %s661_s18, %s767_s18  }
   0x3   : > { %s19_s23 = ssub.s32 %s628_s20, %s678_s22  ;;  %s22_s24 = sadd.s32 1, %s624_s19 }
   0x4   : > { %p20_p0 = scmp.eq.s32.totalorder %s19_s23, 0  ;;  %p29_p1 = scmp.ne.s32.totalorder %s624_s19, %s620_s18 }
   0x5   : > { %p30_p2 = scmp.eq.s32.totalorder %s628_s20, 0  ;;  %p143_p3 = scmp.eq.s32.totalorder %s532_s21, 1 }
   0x6   : > { %s689_s25 = scalar_select %p20_p0, %s624_s19, %s22_s24  }
   0x7   : > { %p31_p4 = por %p30_p2, %p29_p1  ;;  %p691_p5 = por %p143_p3, %p29_p1 }
   0x8   : > { %p535_p6 = scmp.ge.s32.totalorder %s628_s20, 2 }
   0xa   : > { %177 = sbr.rel (%p535_p6) target bundleno = 24 (0x18), region = 32 }
   0xf   : > { %180 = sbr.rel (!%p31_p4) target bundleno = 24 (0x18), region = 36  ;;  %s182_s27 = sand.u32 (%p31_p4), 1, %s624_s19  }
  0x10   : > { %s569_s28 = sshll.u32 (%p31_p4), %s628_s20, 3  ;;  %s576_s29 = smul.u32 (%p31_p4), 40, %s182_s27 }
  0x11   : > { %s187_s7 = scalar_lea.vmem (%p31_p4), %s760_s0, %s569_s28 }
  0x12   : > { %v224_v0 = vld [vmem:[%s187_s7] sm:$0xff] (%p31_p4)  ;;  %v226_v1 = vld [vmem:[%s187_s7 + $0x10] sm:$0xff] (%p31_p4)  ;;  %s184_s8 = scalar_lea.vmem (%p31_p4), [#allocation2], %s576_s29 }
  0x13   : > { %v228_v2 = vld [vmem:[%s187_s7 + $0x20] sm:$0xff] (%p31_p4)  ;;  %225 = vst [vmem:[%s184_s8] sm:$0xff] (%p31_p4), %v224_v0  ;;  %v230_v3 = vld [vmem:[%s187_s7 + $0x30] sm:$0xff] (%p31_p4) }
  0x14   : > { %227 = vst [vmem:[%s184_s8 + $0x8] sm:$0xff] %v226_v1  ;;  %v232_v4 = vld [vmem:[%s187_s7 + $0x40] sm:$0xff] }
  0x15   : > { %229 = vst [vmem:[%s184_s8 + $0x10] sm:$0xff] %v228_v2 }
  0x16   : > { %231 = vst [vmem:[%s184_s8 + $0x18] sm:$0xff] %v230_v3 }
  0x17   : > { %233 = vst [vmem:[%s184_s8 + $0x20] sm:$0xff] %v232_v4 }
  0x18 PF: > { %p538_p7 = scmp.ge.s32.totalorder %s628_s20, 1  ;;  %p238_p8 = scmp.lt.s32.totalorder %s628_s20, 3 }
  0x1a   : > { %p239_p9 = pnand %p538_p7, %p238_p8 }
  0x1b   : > { %s245_s9 = sand.u32 (!%p239_p9), 1, %s620_s18  }
  0x1c   : > { %242 = sbr.rel (%p239_p9) target bundleno = 349 (0x15d), region = 74 }
  0x1d   : > { %s577_s10 = smul.u32 (!%p239_p9), 40, %s245_s9 }
  0x1e   : > { %s578_s8 = smul.u32 (!%p239_p9), 48, %s245_s9 }
  0x1f   : > { %s247_s13 = scalar_lea.vmem (!%p239_p9), [#allocation2], %s577_s10 }
  0x20   : > { %s729_s10 = scalar_lea.vmem (!%p239_p9), [#allocation3], %s578_s8 }
  0x21   : > { %v630_v5 = vmov 0   ;;  %v280_v6 = vld [vmem:[%s762_s2] sm:$0xff]  ;;  %vm315_vm0 = vcmask 1041408   ;;  %v549_v10 = vld [vmem:[%s247_s13 + $0x10] sm:$0xf]  ;;  %vm311_vm1 = vcmask 293888  }
  0x22   : > { %604 = vset.pattern.permute.xlu0 %v630_v5  ;;  %605 = vset.pattern.permute.xlu1 %v630_v5  ;;  %v279_v7 = vld [vmem:[%s247_s13 + $0x20] sm:$0x33]  ;;  %v573_v13 = vld [vmem:[%s247_s13 + $0x14] sm:$0xf0]  ;;  %v572_v14 = vld [vmem:[%s247_s13 + $0x14] sm:$0xf] }
  0x23   : > { %283 = vperm.xlu0 %604, %v280_v6   ;;  %v299_v8 = vunpack.c.l.b16 %v279_v7  ;;  %v300_v9 = vunpack.c.h.b16 %v279_v7  ;;  %v551_v15 = vld [vmem:[%s247_s13 + $0x18] sm:$0xf0]  ;;  %v550_v19 = vor.u32 %v573_v13, %v549_v10  ;;  %v541_v21 = vld [vmem:[%s247_s13] sm:$0xf]  ;;  %v571_v22 = vld [vmem:[%s247_s13 + $0x4] sm:$0xf0] }
  0x24   : > { %v357_v16 = vld [vmem:[%s764_s4] sm:$0xff]  ;;  %v554_v20 = vor.u32 %v572_v14, %v551_v15  ;;  %v543_v24 = vld [vmem:[%s247_s13 + $0x8] sm:$0xf0]  ;;  %v542_v25 = vor.u32 %v571_v22, %v541_v21  ;;  %vm390_vm2 = vcmask 1043456   ;;  %vm383_vm3 = vcmask 64512   ;;  %s575_s18 = sshll.u32 (%p691_p5), %s532_s21, 4 }
  0x25   : > { %v305_v11 = vpack.c.b16 %v299_v8, %v299_v8  ;;  %v306_v12 = vpack.c.b16 %v300_v9, %v300_v9  ;;  %v570_v23 = vld [vmem:[%s247_s13 + $0x4] sm:$0xf]  ;;  %v274_v27 = vld [vmem:[%s761_s1] sm:$0xf]  ;;  %v359_v36 = vld [vmem:[%s764_s4 + $0x10] sm:$0xff]  ;;  %s448_s12 = scalar_lea.vmem (%p691_p5), %s765_s5, %s575_s18 }
  0x26   : > { %v546_v26 = vor.u32 %v570_v23, %v543_v24  ;;  %v358_v28 = vld [vmem:[%s764_s4 + $0x8] sm:$0xff]  ;;  %v574_v45 = vld [vmem:[%s763_s3] sm:$0xff] }
  0x27   : > { %v317_v17 = vsel %vm315_vm0, %v305_v11, 0  ;;  %v320_v18 = vsel %vm315_vm0, %v306_v12, 0  ;;  %367 = vperm.xlu1 %605, %v358_v28   ;;  %v354_v46 = vld [vmem:[%s763_s3 + $0x8] sm:$0xf] }
  0x28   : > { %327 = vmatpush.bf16.msra.mxu0 %v317_v17  ;;  %340 = vmatpush.bf16.msra.mxu1 %v320_v18  ;;  %v380_v47 = vunpack.c.l.b16 %v354_v46 }
  0x2a   : > { %v382_v48 = vpack.c.b16 %v380_v47, %v380_v47 }
  0x2b   : > { %362 = vperm.xlu0 %604, %v357_v16  }
  0x2c   : > { %328 = vmatpush.bf16.msra.mxu0 %v550_v19  ;;  %341 = vmatpush.bf16.msra.mxu1 %v554_v20 }
  0x2f   : > { %372 = vperm.xlu1 %605, %v359_v36  }
  0x30   : > { %329 = vmatpush.bf16.msra.mxu0 %v542_v25  ;;  %342 = vmatpush.bf16.msra.mxu1 %v546_v26 }
  0x33   : > { %555 = vmatmul.msk.bf16.vlgmr.msra.gmra.mxu0 %vm311_vm1, %v274_v27  ;;  %556 = vmatmul.msk.bf16.vlgmr.msra.gmra.mxu1 %vm311_vm1, %v274_v27 }
  0x95   : > { %v284_v29 = vpop.permute.xlu0 %283 }
  0x99   : > { %v368_v54 = vpop.permute.xlu1 %367 }
  0x9d   : > { %v363_v49 = vpop.permute.xlu0 %362 }
  0xa1   : > { %v373_v59 = vpop.permute.xlu1 %372 }
  0xb0   : > { %v331_v30 = vpop.f32.mrf.mxu0  ;;  %v344_v31 = vpop.f32.mrf.mxu1 }
  0xb1   : > { %v332_v32 = vadd.f32 %v331_v30, %v284_v29  ;;  %v345_v33 = vadd.f32 %v344_v31, %v284_v29 }
  0xb3   : > { %v348_v34 = vmul.f32 0.1015625, %v332_v32  ;;  %v349_v35 = vmul.f32 0.1015625, %v345_v33 }
  0xb5   : > { %v350_v37 = vmax.f32 %v332_v32, %v348_v34  ;;  %v351_v38 = vmax.f32 %v345_v33, %v349_v35 }
  0xb7   : > { %v355_v39 = vpack.c.bf16 %v350_v37, %v350_v37  ;;  %v356_v40 = vpack.c.bf16 %v351_v38, %v351_v38 }
  0xb8   : > { %v333_v41 = vpop.f32.mrf.mxu0  ;;  %v346_v42 = vpop.f32.mrf.mxu1 }
  0xb9   : > { %v392_v43 = vsel %vm390_vm2, %v355_v39, 0  ;;  %v395_v44 = vsel %vm390_vm2, %v356_v40, 0 }
  0xba   : > { %404 = vmatpush.bf16.msra.mxu2 %v392_v43  ;;  %422 = vmatpush.bf16.msra.mxu3 %v395_v44 }
  0xbd   : > { %561 = vmatmul.msk.bf16.vlgmr.msra.gmra.mxu2 %vm383_vm3, %v574_v45  ;;  %563 = vmatmul.msk.bf16.vlgmr.msra.gmra.mxu3 %vm383_vm3, %v574_v45 }
  0xcd   : > { %562 = vmatmul.msk.bf16.gmra.mxu2 %vm383_vm3, %v382_v48  ;;  %564 = vmatmul.msk.bf16.gmra.mxu3 %vm383_vm3, %v382_v48 }
 0x140   : > { %v406_v50 = vpop.f32.mrf.mxu2  ;;  %v424_v51 = vpop.f32.mrf.mxu3 }
 0x141   : > { %v407_v52 = vadd.f32 %v406_v50, %v363_v49  ;;  %v425_v53 = vadd.f32 %v424_v51, %v363_v49 }
 0x143   : > { %433 = vst [vmem:[%s729_s10] sm:$0xff] %v407_v52 }
 0x144   : > { %434 = vst [vmem:[%s729_s10 + $0x8] sm:$0xff] %v425_v53 }
 0x148   : > { %v408_v55 = vpop.f32.mrf.mxu2  ;;  %v426_v56 = vpop.f32.mrf.mxu3 }
 0x149   : > { %v409_v57 = vadd.f32 %v408_v55, %v368_v54  ;;  %v427_v58 = vadd.f32 %v426_v56, %v368_v54 }
 0x14a   : > { %v461_v2 = vld [vmem:[%s729_s10] sm:$0xff] (%p691_p5) }
 0x14b   : > { %435 = vst [vmem:[%s729_s10 + $0x10] sm:$0xff] %v409_v57  ;;  %v463_v3 = vld [vmem:[%s729_s10 + $0x8] sm:$0xff] (%p691_p5) }
 0x14c   : > { %436 = vst [vmem:[%s729_s10 + $0x18] sm:$0xff] %v427_v58 }
 0x14d   : > { %462 = vst [vmem:[%s448_s12] sm:$0xff] (%p691_p5), %v461_v2 }
 0x14e   : > { %464 = vst [vmem:[%s448_s12 + $0x8] sm:$0xff] (%p691_p5), %v463_v3 }
 0x150   : > { %v411_v60 = vpop.f32.mrf.mxu2  ;;  %v429_v61 = vpop.f32.mrf.mxu3 }
 0x151   : > { %v412_v62 = vadd.f32 %v411_v60, %v373_v59  ;;  %v430_v63 = vadd.f32 %v429_v61, %v373_v59 }
 0x152   : > { %v465_v4 = vld [vmem:[%s729_s10 + $0x10] sm:$0xff] (%p691_p5) }
 0x153   : > { %437 = vst [vmem:[%s729_s10 + $0x20] sm:$0xff] %v412_v62  ;;  %v467_v5 = vld [vmem:[%s729_s10 + $0x18] sm:$0xff] (%p691_p5) }
 0x154   : > { %438 = vst [vmem:[%s729_s10 + $0x28] sm:$0xff] %v430_v63  ;;  %445 = sbr.rel (!%p691_p5) target bundleno = 349 (0x15d), region = 82 }
 0x155   : > { %466 = vst [vmem:[%s448_s12 + $0x20] sm:$0xff] (%p691_p5), %v465_v4 }
 0x156   : > { %468 = vst [vmem:[%s448_s12 + $0x28] sm:$0xff] (%p691_p5), %v467_v5 }
 0x158   : > { %v413_v0 = vpop.f32.mrf.mxu2  ;;  %v431_v1 = vpop.f32.mrf.mxu3 }
 0x15a   : > { %v469_v6 = vld [vmem:[%s729_s10 + $0x20] sm:$0xff] }
 0x15b   : > { %v471_v7 = vld [vmem:[%s729_s10 + $0x28] sm:$0xff]  ;;  %470 = vst [vmem:[%s448_s12 + $0x40] sm:$0xff] %v469_v6 }
 0x15c   : > { %472 = vst [vmem:[%s448_s12 + $0x48] sm:$0xff] %v471_v7 }
 0x15d PF: > { %p12_p10 = scmp.ge.s32.totalorder %s678_s22, 4   ;;  %s767_s18 = smov %s624_s19 }
 0x15e   : > { %s768_s19 = smov %s689_s25  ;;  %s769_s20 = smov %s678_s22 }
 0x15f   :  { %14 = sbr.rel (!%p12_p10) target bundleno = 2 (0x2), region = 136 }

</bundles_post_ra>
